<compile_context>
chip_gen: v7x
topology: tpu7x:2x2x1
jax: 0.10.0
libtpu: 0.0.40
codegen_flags: <defaults>
</compile_context>

<pallas_src>
import math

import jax
import jax.numpy as jnp
from jax.experimental import pallas as pl
from jax.experimental.pallas import tpu as pltpu

LANE = 128  # TPU vreg lane width
SUBLANE = 8  # TPU vreg sublane count


def _add_pe_kernel(x_ref, pe_ref, o_ref):
    # x_ref: (tile_g, 8, lane), pe_ref: (1, 8, lane) -- broadcast add in native dtype.
    o_ref[...] = x_ref[...] + pe_ref[...]


def learnable_positional_encoding(x, w, b, *, block_bytes=2 << 20,
                                  min_pallas_bytes=1 << 20):
    """x: (..., n), w: (n, n) PyTorch-style (out, in), b: (n,).

    Returns x + Linear(w, b)(arange(n)), broadcast over the trailing dim.
    """
    n = x.shape[-1]
    orig_shape = x.shape
    itemsize = jnp.dtype(x.dtype).itemsize
    total = x.size

    # Hoisted: pe[j] = sum_k k * W[j, k] + b[j]  (tiny, stays in plain JAX).
    pos = jnp.arange(n, dtype=jnp.float32)
    pe = pos @ w.astype(jnp.float32).T + b.astype(jnp.float32)  # (n,)

    # Tiny inputs: launch + per-step overhead dwarfs the op; let XLA fuse it.
    if total * itemsize < min_pallas_bytes:
        return x + pe.astype(x.dtype)

    # Lane-dense layout: lane is a multiple of 128 *and* of n, so the pe
    # pattern has period `lane` along the flattened x and every store is an
    # unmasked 128-lane vst.
    lane = LANE if LANE % n == 0 else math.lcm(n, LANE)

    # Pad the flattened x to a whole number of (8, lane) vreg tiles.
    pad_to = SUBLANE * lane
    padded_total = ((total + pad_to - 1) // pad_to) * pad_to
    xf = x.reshape(-1)
    if padded_total != total:
        xf = jnp.pad(xf, (0, padded_total - total))
    groups = padded_total // pad_to
    x3 = xf.reshape(groups, SUBLANE, lane)

    # pe replicated to a full (1, 8, lane) tile, pre-cast to x.dtype.
    pe_row = jnp.tile(pe, lane // n)                         # (lane,)
    pe_tile = jnp.broadcast_to(pe_row, (1, SUBLANE, lane)).astype(x.dtype)

    # Block size from a ~block_bytes budget; keep >= 2 grid steps when
    # possible so v7x's two TensorCores both stream.
    groups_per_block = max(1, block_bytes // (SUBLANE * lane * itemsize))
    tile_g = max(1, min(groups_per_block, pl.cdiv(groups, 2)))
    grid = (pl.cdiv(groups, tile_g),)

    out3 = pl.pallas_call(
        _add_pe_kernel,
        out_shape=jax.ShapeDtypeStruct((groups, SUBLANE, lane), x.dtype),
        grid_spec=pltpu.PrefetchScalarGridSpec(
            num_scalar_prefetch=0,
            grid=grid,
            in_specs=[
                pl.BlockSpec((tile_g, SUBLANE, lane), lambda i: (i, 0, 0)),
                # Constant index_map -> pe tile stays VMEM-resident across steps.
                pl.BlockSpec((1, SUBLANE, lane), lambda i: (0, 0, 0)),
            ],
            out_specs=pl.BlockSpec((tile_g, SUBLANE, lane), lambda i: (i, 0, 0)),
        ),
        compiler_params=pltpu.CompilerParams(
            dimension_semantics=("parallel",),
        ),
    )(x3, pe_tile)

    out = out3.reshape(-1)
    if padded_total != total:
        out = out[:total]
    return out.reshape(orig_shape)


def reference(x, w, b):
    n = x.shape[-1]
    pos = jnp.arange(n, dtype=jnp.float32)
    pe = pos @ w.T + b
    return x + pe


def _make_linear_params(key, n):
    kw, kb = jax.random.split(key)
    bound = 1.0 / jnp.sqrt(jnp.float32(n))
    w = jax.random.uniform(kw, (n, n), dtype=jnp.float32, minval=-bound, maxval=bound)
    b = jax.random.uniform(kb, (n,), dtype=jnp.float32, minval=-bound, maxval=bound)
    return w, b


if __name__ == "__main__":
    key = jax.random.PRNGKey(0)
    kx, kp = jax.random.split(key)

    # Module-consistent small shape: x (batch=2, seq=8, n=32).
    N = 32
    w, b = _make_linear_params(kp, N)
    x = jax.random.normal(kx, (2, 8, N), dtype=jnp.float32)

    # 1) Spec shape forced through the Pallas path (exercises padding: 4 rows -> 8).
    out = jax.block_until_ready(
        learnable_positional_encoding(x, w, b, min_pallas_bytes=0))
    ref = reference(x, w, b)
    assert out.shape == x.shape and out.dtype == x.dtype
    assert jnp.allclose(out, ref, atol=1e-5, rtol=1e-5)

    # 2) Default dispatch on the tiny input takes the fused plain-JAX path.
    out_small = jax.block_until_ready(learnable_positional_encoding(x, w, b))
    assert jnp.allclose(out_small, ref, atol=1e-5, rtol=1e-5)

    # 3) n that does not divide 128 -> lcm(n, 128)-lane padded path (still lane-dense).
    N2 = 48
    kx2, kp2 = jax.random.split(jax.random.PRNGKey(1))
    w2, b2 = _make_linear_params(kp2, N2)
    x2 = jax.random.normal(kx2, (2, 8, N2), dtype=jnp.float32)
    out2 = jax.block_until_ready(
        learnable_positional_encoding(x2, w2, b2, min_pallas_bytes=0))
    assert jnp.allclose(out2, reference(x2, w2, b2), atol=1e-5, rtol=1e-5)

    # 4) Moderate input that dispatches to Pallas by default with a >=2-step grid.
    x3 = jax.random.normal(jax.random.PRNGKey(2), (16, 512, N), dtype=jnp.float32)
    out3 = jax.block_until_ready(learnable_positional_encoding(x3, w, b))
    assert jnp.allclose(out3, reference(x3, w, b), atol=1e-5, rtol=1e-5)

    print("KERNEL_OK")
</pallas_src>

<mosaic_0001>
module attributes {stable_mosaic.version = 11 : i64} {
  func.func @_add_pe_kernel(%arg0: i32, %arg1: memref<1x8x128xf32, #tpu.memory_space<vmem>>, %arg2: memref<1x8x128xf32, #tpu.memory_space<vmem>>, %arg3: memref<1x8x128xf32, #tpu.memory_space<vmem>>) attributes {dimension_semantics = [#tpu.dimension_semantics<parallel>], iteration_bounds = array<i64: 1>, scalar_prefetch = 0 : i64, scratch_operands = 0 : i64, tpu.core_type = #tpu.core_type<tc>, window_params = [{transform_indices = @transform_0, window_bounds = array<i64: 1, 8, 128>}, {pipeline_mode = #tpu.pipeline_mode<synchronous>, transform_indices = @transform_1, window_bounds = array<i64: 1, 8, 128>}, {transform_indices = @transform_2, window_bounds = array<i64: 1, 8, 128>}]} {
    %c0 = arith.constant 0 : index
    %c0_0 = arith.constant 0 : index
    %c0_1 = arith.constant 0 : index
    %0 = vector.load %arg1[%c0, %c0_0, %c0_1] : memref<1x8x128xf32, #tpu.memory_space<vmem>>, vector<1x8x128xf32>
    %c0_2 = arith.constant 0 : index
    %c0_3 = arith.constant 0 : index
    %c0_4 = arith.constant 0 : index
    %1 = vector.load %arg2[%c0_2, %c0_3, %c0_4] : memref<1x8x128xf32, #tpu.memory_space<vmem>>, vector<1x8x128xf32>
    %2 = arith.addf %0, %1 : vector<1x8x128xf32>
    %c0_5 = arith.constant 0 : index
    %c0_6 = arith.constant 0 : index
    %c0_7 = arith.constant 0 : index
    %3 = vector.load %arg3[%c0_5, %c0_6, %c0_7] : memref<1x8x128xf32, #tpu.memory_space<vmem>>, vector<1x8x128xf32>
    tpu.vector_store %arg3[%c0_5, %c0_6, %c0_7], %2 {strides = array<i32>} : memref<1x8x128xf32, #tpu.memory_space<vmem>>, vector<1x8x128xf32>,
    return
  }
  func.func @transform_0(%arg0: i32) -> (i32, i32, i32) {
    %c0_i32 = arith.constant 0 : i32
    %c0_i32_0 = arith.constant 0 : i32
    %c0_i32_1 = arith.constant 0 : i32
    return %arg0, %c0_i32, %c0_i32_0 : i32, i32, i32
  }
  func.func @transform_1(%arg0: i32) -> (i32, i32, i32) {
    %c0_i32 = arith.constant 0 : i32
    %c0_i32_0 = arith.constant 0 : i32
    %c0_i32_1 = arith.constant 0 : i32
    %c0_i32_2 = arith.constant 0 : i32
    return %c0_i32, %c0_i32_0, %c0_i32_1 : i32, i32, i32
  }
  func.func @transform_2(%arg0: i32) -> (i32, i32, i32) {
    %c0_i32 = arith.constant 0 : i32
    %c0_i32_0 = arith.constant 0 : i32
    %c0_i32_1 = arith.constant 0 : i32
    return %arg0, %c0_i32, %c0_i32_0 : i32, i32, i32
  }
}

</mosaic_0001>

<bundles_post_ra>
// kernel: tpu_custom_call.1
= control target key start
LH: loop header
LB: loop body
LE: loop exit
PB: predicated region body
PF: predicated region fallthrough
CT: control target
= control target key end

     0   :  { %7 = vsyncpa [#allocation3], 0  ;;  %s185_s0 = inlined_call_operand.hbm [shape: f32[1,8,128], index: 0, kind: input, shape index: {}]   ;;  %s186_s1 = inlined_call_operand.hbm [shape: f32[1,8,128], index: 1, kind: input, shape index: {}]   ;;  %s187_s2 = inlined_call_operand.hbm [shape: f32[1,8,128], index: 2, kind: output, shape index: {}]  }
   0x1   :  { %8 = vsyncpa [#allocation6], 0 }
   0x2   :  { %9 = vsyncpa [#allocation4], 0  ;;  %s131_s9 = smov [#allocation2]   ;;  %s132_s11 = smov [#allocation5]  }
   0x3   :  { %s16_s10 = sshll.u32 %s131_s9, 4  ;;  %s26_s12 = sshll.u32 %s132_s11, 4  ;;  %s17_s10 = int_to_ptr.vmem [resolvable:$true] %s16_s10  ;;  %s27_s12 = int_to_ptr.vmem [resolvable:$true] %s26_s12 }
   0x4   :  { %s59_s15 = scalar_lea.hbm %s185_s0, 128 }
   0x5   :  { %p60_p0 = scmp.ne.s32.totalorder %s185_s0, %s59_s15  ;;  %p63_p1 = scmp.lt.u32.totalorder %s59_s15, %s185_s0 }
   0x7   :  { %p65_p2 = pnand %p63_p1, %p60_p0 }
   0x9   :  { %68 = shalt.err (!%p65_p2)
}
   0xa   :  { %s69_s20 = scalar_lea.vmem %s17_s10, 128  ;;  %p74_p4 = scmp.lt.s32.totalorder %s17_s10, %s17_s10 }
   0xb   :  { %p70_p3 = scmp.ne.s32.totalorder %s17_s10, %s69_s20  ;;  %p75_p5 = scmp.lt.s32.totalorder %s69_s20, %s69_s20 }
   0xd   :  { %p76_p6 = por %p75_p5, %p74_p4 }
   0xf   :  { %p77_p7 = pnand %p76_p6, %p70_p3 }
  0x11   :  { %80 = shalt.err (!%p77_p7)
}
  0x12   :  { %19 = dma.hbm_to_vmem [thread:$0]  %s185_s0, 128, %s17_s10, [#allocation3]  }
  0x13   :  { %s81_s25 = scalar_lea.hbm %s186_s1, 128 }
  0x14   :  { %p82_p8 = scmp.ne.s32.totalorder %s186_s1, %s81_s25  ;;  %p85_p9 = scmp.lt.u32.totalorder %s81_s25, %s186_s1 }
  0x16   :  { %p87_p10 = pnand %p85_p9, %p82_p8 }
  0x18   :  { %90 = shalt.err (!%p87_p10)
}
  0x19   :  { %s91_s30 = scalar_lea.vmem %s27_s12, 128  ;;  %p96_p12 = scmp.lt.s32.totalorder %s27_s12, %s27_s12 }
  0x1a   :  { %p92_p11 = scmp.ne.s32.totalorder %s27_s12, %s91_s30  ;;  %p97_p13 = scmp.lt.s32.totalorder %s91_s30, %s91_s30 }
  0x1c   :  { %p98_p0 = por %p97_p13, %p96_p12 }
  0x1e   :  { %p99_p1 = pnand %p98_p0, %p92_p11 }
  0x20   :  { %102 = shalt.err (!%p99_p1)
}
  0x21   :  { %29 = dma.hbm_to_vmem [thread:$0]  %s186_s1, 128, %s27_s12, [#allocation6]  }
  0x22   :  { %125 = dma.done.wait [#allocation3], 128  }
  0x23   :  { %126 = vsyncadd [#allocation3], 4294967168 }
  0x24   :  { %127 = dma.done.wait [#allocation6], 128  }
  0x25   :  { %128 = vsyncadd [#allocation6], 4294967168  ;;  %s133_s4 = smov [#allocation7]   ;;  %v36_v0 = vld [vmem:[#allocation2] sm:$0xff]  ;;  %v37_v1 = vld [vmem:[#allocation5] sm:$0xff] }
  0x26   :  { %s46_s5 = sshll.u32 %s133_s4, 4  ;;  %v38_v2 = vadd.f32 %v37_v1, %v36_v0  ;;  %s47_s5 = int_to_ptr.vmem [resolvable:$true] %s46_s5 }
  0x27   :  { %s103_s6 = scalar_lea.vmem %s47_s5, 128  ;;  %p108_p3 = scmp.lt.s32.totalorder %s47_s5, %s47_s5 }
  0x28   :  { %39 = vst [vmem:[#allocation7] sm:$0xff] %v38_v2  ;;  %p104_p2 = scmp.ne.s32.totalorder %s47_s5, %s103_s6  ;;  %p109_p4 = scmp.lt.s32.totalorder %s103_s6, %s103_s6 }
  0x2a   :  { %p110_p5 = por %p109_p4, %p108_p3 }
  0x2c   :  { %p111_p6 = pnand %p110_p5, %p104_p2 }
  0x2e   :  { %114 = shalt.err (!%p111_p6)
}
  0x2f   :  { %s115_s8 = scalar_lea.hbm %s187_s2, 128 }
  0x30   :  { %p116_p7 = scmp.ne.s32.totalorder %s187_s2, %s115_s8  ;;  %p119_p8 = scmp.lt.u32.totalorder %s115_s8, %s187_s2 }
  0x32   :  { %p121_p9 = pnand %p119_p8, %p116_p7 }
  0x34   :  { %124 = shalt.err (!%p121_p9)
}
  0x35   :  { %49 = dma.vmem_to_hbm [thread:$0]  %s47_s5, 128, %s187_s2, [#allocation4]  }
  0x36   :  { %129 = dma.done.wait [#allocation4], 128  }
  0x37   :  { %130 = vsyncadd [#allocation4], 4294967168 }
  0x38   :  { %53 = vsyncpa [#allocation3], 1 }
  0x39   :  { %54 = vsyncpa [#allocation6], 1 }
  0x3a   :  { %55 = vsyncpa [#allocation4], 1 }

</bundles_post_ra>
